<compile_context>
chip_gen: v7x
topology: tpu7x:2x2x1
jax: 0.10.0
libtpu: 0.0.40
codegen_flags: <defaults>
</compile_context>

<pallas_src>
import jax
import jax.numpy as jnp
from jax import lax
from jax.experimental import pallas as pl
from jax.experimental.pallas import tpu as pltpu

D = 50                # LayerNorm normalized dim (nn.LayerNorm(50))
EPS = 1e-5            # PyTorch LayerNorm default eps
MAX_ROW_TILE = 8192   # ~1.6 MiB f32 per block; in+out double-buffered ~6.4 MiB


def residual_add_kernel(x_ref, gamma_ref, beta_ref, w_ref, wb_ref, o_ref):
    # x_ref: (row_tile, D)   gamma/beta/wb: (1, D)   w: (D, D)
    x = x_ref[...].astype(jnp.float32)                 # residual = original x

    # LayerNorm over the last dim (biased variance, as in torch.nn.LayerNorm).
    mean = jnp.mean(x, axis=-1, keepdims=True)
    diff = x - mean
    var = jnp.mean(diff * diff, axis=-1, keepdims=True)
    xn = diff * lax.rsqrt(var + EPS)                   # rsqrt -> EUP slot
    xn = xn * gamma_ref[...] + beta_ref[...]

    # fn(x): Linear(50 -> 50) on the MXU (f32 accumulate).
    y = jnp.dot(xn, w_ref[...], preferred_element_type=jnp.float32)
    y = y + wb_ref[...]

    # Residual add.
    o_ref[...] = (y + x).astype(o_ref.dtype)


def _round_up(n, m):
    return -(-n // m) * m


def _choose_tiling(n_rows):
    """Pick (row_tile, n_rows_padded).

    Large tiles amortize the ~0.35 us per-grid-step overhead; >=2 steps keeps
    both v7x TensorCores busy on the 'parallel' axis; sizing the tile from the
    step count (instead of a fixed power of two) keeps tail padding to at most
    ~8 rows per step.
    """
    n_steps = max(2, -(-n_rows // MAX_ROW_TILE))
    row_tile = max(8, _round_up(-(-n_rows // n_steps), 8))
    row_tile = min(row_tile, MAX_ROW_TILE)
    n_pad = _round_up(n_rows, row_tile)
    return row_tile, n_pad


def residual_add(x, gamma, beta, w, wb):
    """x: [B, S, D] -> [B, S, D]  (= LayerNorm(x) @ w + wb + x)."""
    B, S, d = x.shape
    assert d == D
    n_rows = B * S
    x2 = x.reshape(n_rows, D)

    row_tile, n_pad = _choose_tiling(n_rows)
    if n_pad != n_rows:
        # Zero-pad the tail; padded rows produce finite garbage that is sliced
        # off below (cheaper than masked stores in-kernel).
        x2 = jnp.pad(x2, ((0, n_pad - n_rows), (0, 0)))

    out = pl.pallas_call(
        residual_add_kernel,
        out_shape=jax.ShapeDtypeStruct((n_pad, D), x.dtype),
        grid_spec=pltpu.PrefetchScalarGridSpec(
            num_scalar_prefetch=0,
            grid=(n_pad // row_tile,),
            in_specs=[
                pl.BlockSpec((row_tile, D), lambda i: (i, 0)),   # x rows
                pl.BlockSpec((1, D), lambda i: (0, 0)),          # gamma
                pl.BlockSpec((1, D), lambda i: (0, 0)),          # beta
                pl.BlockSpec((D, D), lambda i: (0, 0)),          # fn weight
                pl.BlockSpec((1, D), lambda i: (0, 0)),          # fn bias
            ],
            out_specs=pl.BlockSpec((row_tile, D), lambda i: (i, 0)),
        ),
        compiler_params=pltpu.CompilerParams(
            dimension_semantics=("parallel",)),
    )(x2, gamma, beta, w, wb)

    if n_pad != n_rows:
        out = out[:n_rows]
    return out.reshape(B, S, D)


def reference(x, gamma, beta, w, wb):
    xf = x.astype(jnp.float32)
    mean = jnp.mean(xf, axis=-1, keepdims=True)
    var = jnp.mean((xf - mean) ** 2, axis=-1, keepdims=True)
    xn = (xf - mean) * lax.rsqrt(var + EPS) * gamma + beta
    y = jnp.einsum("bsd,de->bse", xn, w) + wb
    return (y + xf).astype(x.dtype)


if __name__ == "__main__":
    key = jax.random.PRNGKey(0)
    kx, kw, kb, kg, kbe, kx2, kx3 = jax.random.split(key, 7)

    # Primary small test: B=2, S=8, D=50 (16 rows -> tile 8, grid of 2).
    B, S = 2, 8
    x = jax.random.normal(kx, (B, S, D), dtype=jnp.float32)

    # LayerNorm affine params (2-D for TPU; non-trivial values to exercise
    # the affine path — PyTorch defaults would be ones/zeros).
    gamma = 1.0 + 0.1 * jax.random.normal(kg, (1, D), dtype=jnp.float32)
    beta = 0.1 * jax.random.normal(kbe, (1, D), dtype=jnp.float32)

    # Deterministic synthetic fn = Linear(50, 50).
    w = jax.random.normal(kw, (D, D), dtype=jnp.float32) * 0.05
    wb = jax.random.normal(kb, (1, D), dtype=jnp.float32) * 0.05

    out = jax.block_until_ready(residual_add(x, gamma, beta, w, wb))
    ref = reference(x, gamma, beta, w, wb)
    assert out.shape == x.shape and out.dtype == x.dtype
    assert jnp.allclose(out, ref, atol=1e-4, rtol=1e-4)

    # Tail-handling test: B*S = 21 rows is not a multiple of the row tile.
    x_odd = jax.random.normal(kx2, (3, 7, D), dtype=jnp.float32)
    out_odd = jax.block_until_ready(residual_add(x_odd, gamma, beta, w, wb))
    ref_odd = reference(x_odd, gamma, beta, w, wb)
    assert out_odd.shape == x_odd.shape
    assert jnp.allclose(out_odd, ref_odd, atol=1e-4, rtol=1e-4)

    # Moderately sized test: exercises the multi-step tile selection path.
    x_big = jax.random.normal(kx3, (4, 500, D), dtype=jnp.float32)
    out_big = jax.block_until_ready(residual_add(x_big, gamma, beta, w, wb))
    ref_big = reference(x_big, gamma, beta, w, wb)
    assert out_big.shape == x_big.shape
    assert jnp.allclose(out_big, ref_big, atol=1e-4, rtol=1e-4)

    print("KERNEL_OK")
</pallas_src>

<mosaic_0001>
module attributes {stable_mosaic.version = 11 : i64} {
  func.func @residual_add_kernel(%arg0: i32, %arg1: memref<8x50xf32, #tpu.memory_space<vmem>>, %arg2: memref<1x50xf32, #tpu.memory_space<vmem>>, %arg3: memref<1x50xf32, #tpu.memory_space<vmem>>, %arg4: memref<50x50xf32, #tpu.memory_space<vmem>>, %arg5: memref<1x50xf32, #tpu.memory_space<vmem>>, %arg6: memref<8x50xf32, #tpu.memory_space<vmem>>) attributes {dimension_semantics = [#tpu.dimension_semantics<parallel>], iteration_bounds = array<i64: 2>, scalar_prefetch = 0 : i64, scratch_operands = 0 : i64, tpu.core_type = #tpu.core_type<tc>, window_params = [{transform_indices = @transform_0, window_bounds = array<i64: 8, 50>}, {pipeline_mode = #tpu.pipeline_mode<synchronous>, transform_indices = @transform_1, window_bounds = array<i64: 1, 50>}, {pipeline_mode = #tpu.pipeline_mode<synchronous>, transform_indices = @transform_2, window_bounds = array<i64: 1, 50>}, {pipeline_mode = #tpu.pipeline_mode<synchronous>, transform_indices = @transform_3, window_bounds = array<i64: 50, 50>}, {pipeline_mode = #tpu.pipeline_mode<synchronous>, transform_indices = @transform_4, window_bounds = array<i64: 1, 50>}, {transform_indices = @transform_5, window_bounds = array<i64: 8, 50>}]} {
    %c0 = arith.constant 0 : index
    %c0_0 = arith.constant 0 : index
    %0 = vector.load %arg1[%c0, %c0_0] : memref<8x50xf32, #tpu.memory_space<vmem>>, vector<8x50xf32>
    %cst = arith.constant dense<0.000000e+00> : vector<8xf32>
    %1 = vector.multi_reduction <add>, %0, %cst [1] : vector<8x50xf32> to vector<8xf32>
    %2 = vector.shape_cast %1 : vector<8xf32> to vector<8x1xf32>
    %cst_1 = arith.constant 5.000000e+01 : f32
    %3 = vector.broadcast %cst_1 : f32 to vector<8x1xf32>
    %4 = arith.divf %2, %3 : vector<8x1xf32>
    %5 = vector.broadcast %4 : vector<8x1xf32> to vector<8x50xf32>
    %6 = arith.subf %0, %5 : vector<8x50xf32>
    %7 = arith.mulf %6, %6 : vector<8x50xf32>
    %cst_2 = arith.constant dense<0.000000e+00> : vector<8xf32>
    %8 = vector.multi_reduction <add>, %7, %cst_2 [1] : vector<8x50xf32> to vector<8xf32>
    %9 = vector.shape_cast %8 : vector<8xf32> to vector<8x1xf32>
    %cst_3 = arith.constant 5.000000e+01 : f32
    %10 = vector.broadcast %cst_3 : f32 to vector<8x1xf32>
    %11 = arith.divf %9, %10 : vector<8x1xf32>
    %cst_4 = arith.constant 9.99999974E-6 : f32
    %12 = vector.broadcast %cst_4 : f32 to vector<8x1xf32>
    %13 = arith.addf %11, %12 : vector<8x1xf32>
    %14 = math.rsqrt %13 : vector<8x1xf32>
    %15 = vector.broadcast %14 : vector<8x1xf32> to vector<8x50xf32>
    %16 = arith.mulf %6, %15 : vector<8x50xf32>
    %c0_5 = arith.constant 0 : index
    %c0_6 = arith.constant 0 : index
    %17 = vector.load %arg2[%c0_5, %c0_6] : memref<1x50xf32, #tpu.memory_space<vmem>>, vector<1x50xf32>
    %18 = vector.broadcast %17 : vector<1x50xf32> to vector<8x50xf32>
    %19 = arith.mulf %16, %18 : vector<8x50xf32>
    %c0_7 = arith.constant 0 : index
    %c0_8 = arith.constant 0 : index
    %20 = vector.load %arg3[%c0_7, %c0_8] : memref<1x50xf32, #tpu.memory_space<vmem>>, vector<1x50xf32>
    %21 = vector.broadcast %20 : vector<1x50xf32> to vector<8x50xf32>
    %22 = arith.addf %19, %21 : vector<8x50xf32>
    %c0_9 = arith.constant 0 : index
    %c0_10 = arith.constant 0 : index
    %23 = vector.load %arg4[%c0_9, %c0_10] : memref<50x50xf32, #tpu.memory_space<vmem>>, vector<50x50xf32>
    %cst_11 = arith.constant dense<0.000000e+00> : vector<8x50xf32>
    %24 = tpu.matmul %22, %23, %cst_11 {dimension_numbers = #tpu.dot_dimension_numbers<[1], [0], [0], [1], [0, 0, 1, 1], [], []>} : vector<8x50xf32>, vector<50x50xf32>, vector<8x50xf32> -> vector<8x50xf32>
    %c0_12 = arith.constant 0 : index
    %c0_13 = arith.constant 0 : index
    %25 = vector.load %arg5[%c0_12, %c0_13] : memref<1x50xf32, #tpu.memory_space<vmem>>, vector<1x50xf32>
    %26 = vector.broadcast %25 : vector<1x50xf32> to vector<8x50xf32>
    %27 = arith.addf %24, %26 : vector<8x50xf32>
    %28 = arith.addf %27, %0 : vector<8x50xf32>
    %c0_14 = arith.constant 0 : index
    %c0_15 = arith.constant 0 : index
    %29 = vector.load %arg6[%c0_14, %c0_15] : memref<8x50xf32, #tpu.memory_space<vmem>>, vector<8x50xf32>
    tpu.vector_store %arg6[%c0_14, %c0_15], %28 {strides = array<i32>} : memref<8x50xf32, #tpu.memory_space<vmem>>, vector<8x50xf32>,
    return
  }
  func.func @transform_0(%arg0: i32) -> (i32, i32) {
    %c0_i32 = arith.constant 0 : i32
    %c0_i32_0 = arith.constant 0 : i32
    return %arg0, %c0_i32 : i32, i32
  }
  func.func @transform_1(%arg0: i32) -> (i32, i32) {
    %c0_i32 = arith.constant 0 : i32
    %c0_i32_0 = arith.constant 0 : i32
    %c0_i32_1 = arith.constant 0 : i32
    return %c0_i32, %c0_i32_0 : i32, i32
  }
  func.func @transform_2(%arg0: i32) -> (i32, i32) {
    %c0_i32 = arith.constant 0 : i32
    %c0_i32_0 = arith.constant 0 : i32
    %c0_i32_1 = arith.constant 0 : i32
    return %c0_i32, %c0_i32_0 : i32, i32
  }
  func.func @transform_3(%arg0: i32) -> (i32, i32) {
    %c0_i32 = arith.constant 0 : i32
    %c0_i32_0 = arith.constant 0 : i32
    %c0_i32_1 = arith.constant 0 : i32
    return %c0_i32, %c0_i32_0 : i32, i32
  }
  func.func @transform_4(%arg0: i32) -> (i32, i32) {
    %c0_i32 = arith.constant 0 : i32
    %c0_i32_0 = arith.constant 0 : i32
    %c0_i32_1 = arith.constant 0 : i32
    return %c0_i32, %c0_i32_0 : i32, i32
  }
  func.func @transform_5(%arg0: i32) -> (i32, i32) {
    %c0_i32 = arith.constant 0 : i32
    %c0_i32_0 = arith.constant 0 : i32
    return %arg0, %c0_i32 : i32, i32
  }
}

</mosaic_0001>

<bundles_post_ra>
// kernel: tpu_custom_call.1
= control target key start
LH: loop header
LB: loop body
LE: loop exit
PB: predicated region body
PF: predicated region fallthrough
CT: control target
= control target key end

     0   :  { %10 = vsyncpa [#allocation3], 0  ;;  %s972_s0 = inlined_call_operand.hbm [shape: f32[16,50], index: 0, kind: input, shape index: {}]   ;;  %s973_s1 = inlined_call_operand.vmem [shape: f32[1,50], index: 1, kind: input, shape index: {}]   ;;  %s974_s2 = inlined_call_operand.vmem [shape: f32[1,50], index: 2, kind: input, shape index: {}]   ;;  %s975_s3 = inlined_call_operand.hbm [shape: f32[50,50], index: 3, kind: input, shape index: {}]   ;;  %s976_s4 = inlined_call_operand.vmem [shape: f32[1,50], index: 4, kind: input, shape index: {}]   ;;  %s977_s5 = inlined_call_operand.hbm [shape: f32[16,50], index: 5, kind: output, shape index: {}]  }
   0x1   :  { %12 = vsyncpa [#allocation3 + $0x1], 0 }
   0x2   :  { %13 = vsyncpa [#allocation6], 0 }
   0x3   :  { %14 = vsyncpa [#allocation4], 0 }
   0x4   :  { %16 = vsyncpa [#allocation4 + $0x1], 0  ;;  %s759_s18 = smov 0   ;;  %s761_s19 = smov 0  }
   0x5   :  { %s763_s20 = smov 0   ;;  %s765_s21 = smov 0  }
   0x6 LB: > { %s780_s22 = sadd.s32 4294967295, %s719_s21   ;;  %s474_s23 = sadd.s32 4294967294, %s719_s21   ;;  %s719_s21 = sphi %s765_s21, %s997_s21   ;;  %s715_s20 = sphi %s763_s20, %s996_s20   ;;  %s711_s19 = sphi %s761_s19, %s995_s19   ;;  %s707_s18 = sphi %s759_s18, %s994_s18  }
   0x7   : > { %p42_p0 = scmp.ne.s32.totalorder %s711_s19, %s707_s18  ;;  %p978_p1 = scmp.eq.s32.totalorder %s780_s22, 0 }
   0x8   : > { %p156_p3 = scmp.eq.s32.totalorder %s474_s23, 1  ;;  %p475_p5 = scmp.ge.s32.totalorder %s719_s21, 1 }
   0x9   : > { %p789_p4 = por %p978_p1, %p42_p0  ;;  %p163_p7 = scmp.lt.s32.totalorder %s719_s21, 3 }
   0xa   : > { %p794_p6 = por %p156_p3, %p42_p0  ;;  %s721_s27 = smov [#allocation5]  }
   0xb   : > { %s981_s24 = scalar_select %p789_p4, 1, 0 }
   0xc   : > { %s982_s25 = scalar_select %p794_p6, 1, 0 }
   0xd   : > { %p799_p8 = pnand %p475_p5, %p163_p7  ;;  %s181_s28 = sshll.u32 %s721_s27, 4  ;;  %s803_s28 = int_to_ptr.vmem [resolvable:$true] %s181_s28 }
   0xe   : > { %s815_s30 = sadd.s32 1, %s719_s21   ;;  %s29_s6 = sadd.s32 1, %s715_s20 }
   0xf   : > { %s983_s26 = scalar_select %p799_p8, 1, 0 }
  0x10   : > { %p535_p9 = pneg %p799_p8  ;;  %s26_s7 = ssub.s32 %s719_s21, %s815_s30 }
  0x11   : > { %s591_s10 = scalar_lea.hbm %s975_s3, 896 }
  0x12   : > { %p810_p11 = pnand %p535_p9, %p978_p1  ;;  %p592_p12 = scmp.ne.s32.totalorder %s975_s3, %s591_s10 }
  0x13   : > { %p598_p5 = scmp.lt.u32.totalorder %s591_s10, %s975_s3 }
  0x14   : > { %p593_p13 = pneg %p810_p11 }
  0x16   : > { %p594_p0 = pnand %p593_p13, %p592_p12 }
  0x18   : > { %p595_p3 = pneg %p594_p0 }
  0x1a   : > { %p600_p7 = pnand %p598_p5, %p595_p3 }
  0x1c   : > { %603 = shalt.err (!%p600_p7)
}
  0x1d   : > { %s604_s15 = scalar_lea.vmem %s803_s28, 896  ;;  %p612_p2 = scmp.lt.s32.totalorder %s803_s28, %s803_s28 }
  0x1e   : > { %p605_p9 = scmp.ne.s32.totalorder %s803_s28, %s604_s15  ;;  %p613_p6 = scmp.lt.s32.totalorder %s604_s15, %s604_s15 }
  0x20   : > { %p607_p10 = pnand %p605_p9, %p593_p13  ;;  %p614_p4 = por %p613_p6, %p612_p2 }
  0x22   : > { %p608_p1 = pneg %p607_p10 }
  0x24   : > { %p615_p8 = pnand %p614_p4, %p608_p1 }
  0x26   : > { %618 = shalt.err (!%p615_p8)
}
  0x27   : > { %s722_s16 = smov 128   ;;  %s723_s17 = smov 8  }
  0x28   : > { %538 = dma.hbm_to_vmem [thread:$0]  (!%p810_p11), %s975_s3, 896, %s803_s28, [#allocation6], %s722_s16, %s722_s16, %s723_s17  }
  0x29   : > { %p27_p2 = scmp.eq.s32.totalorder %s26_s7, 0  ;;  %p36_p1 = scmp.ne.s32.totalorder %s715_s20, %s711_s19 }
  0x2a   : > { %p37_p4 = scmp.eq.s32.totalorder %s719_s21, 0  ;;  %p548_p6 = scmp.lt.s32.totalorder %s719_s21, 2 }
  0x2b   : > { %s846_s8 = scalar_select %p27_p2, %s715_s20, %s29_s6  }
  0x2c   : > { %p38_p8 = por %p37_p4, %p36_p1  ;;  %p985_p10 = scmp.eq.s32.totalorder %s780_s22, 1 }
  0x2d   : > { %s198_s10 = sand.u32 1, %s715_s20   ;;  %s479_s11 = sshll.u32 %s719_s21, 7 }
  0x2e   : > { %p850_p12 = por %p985_p10, %p36_p1  ;;  %s478_s12 = sshll.u32 %s198_s10, 3 }
  0x2f   : > { %s859_s14 = scalar_lea.hbm %s972_s0, %s479_s11  ;;  %s202_s28 = scalar_lea.vmem [#allocation2], %s478_s12 }
  0x30   : > { %s209_s6 = sshll.u32 %s202_s28, 4  ;;  %p861_p11 = pnand %p548_p6, %p38_p8  ;;  %s865_s6 = int_to_ptr.vmem [resolvable:$true] %s209_s6 }
  0x31   : > { %s199_s15 = scalar_lea.sflag [#allocation3], %s198_s10  ;;  %s619_s16 = scalar_lea.hbm %s859_s14, 128 }
  0x32   : > { %p620_p13 = scmp.ne.s32.totalorder %s859_s14, %s619_s16  ;;  %p621_p0 = pneg %p861_p11 }
  0x33   : > { %s624_s27 = scalar_lea.hbm %s972_s0, 256  ;;  %p625_p7 = scmp.lt.u32.totalorder %s859_s14, %s972_s0 }
  0x34   : > { %p622_p3 = pnand %p621_p0, %p620_p13  ;;  %p626_p9 = scmp.lt.u32.totalorder %s624_s27, %s619_s16 }
  0x35   : > { %p628_p1 = scmp.lt.u32.totalorder %s619_s16, %s859_s14 }
  0x36   : > { %p623_p5 = pneg %p622_p3  ;;  %p627_p2 = por %p626_p9, %p625_p7 }
  0x38   : > { %p629_p4 = por %p628_p1, %p627_p2 }
  0x3a   : > { %p630_p6 = pnand %p629_p4, %p623_p5 }
  0x3c   : > { %633 = shalt.err (!%p630_p6)
}
  0x3d   : > { %s634_s10 = scalar_lea.vmem %s865_s6, 128  ;;  %s724_s29 = smov [#allocation2]  }
  0x3e   : > { %p635_p8 = scmp.ne.s32.totalorder %s865_s6, %s634_s10  ;;  %s639_s13 = sshll.u32 %s724_s29, 4  ;;  %s640_s13 = int_to_ptr.vmem [resolvable:$false] %s639_s13 }
  0x3f   : > { %s641_s28 = scalar_lea.vmem %s640_s13, 256  ;;  %p642_p3 = scmp.lt.s32.totalorder %s865_s6, %s640_s13 }
  0x40   : > { %p637_p10 = pnand %p635_p8, %p621_p0  ;;  %p643_p7 = scmp.lt.s32.totalorder %s641_s28, %s634_s10 }
  0x42   : > { %p638_p13 = pneg %p637_p10  ;;  %p644_p9 = por %p643_p7, %p642_p3 }
  0x44   : > { %p645_p2 = pnand %p644_p9, %p638_p13 }
  0x46   : > { %648 = shalt.err (!%p645_p2)
}
  0x47   : > { %542 = dma.hbm_to_vmem [thread:$0]  (!%p861_p11), %s859_s14, 128, %s865_s6, %s199_s15  }
  0x48   : > { %p988_p5 = scmp.ne.s32.totalorder %s983_s26, 0 }
  0x49   : > { %s895_s16 = sand.u32 (!%p988_p5), 1, %s711_s19   ;;  %p989_p0 = scmp.ne.s32.totalorder (!%p988_p5), %s981_s24, 0 }
  0x4a   : > { %218 = sbr.rel (%p988_p5) target bundleno = 629 (0x275), region = 40  ;;  %s481_s17 = sshll.u32 (!%p988_p5), %s895_s16, 3 }
  0x4b   : > { %s221_s23 = scalar_lea.sflag (!%p988_p5), [#allocation3], %s895_s16  ;;  %s224_s27 = scalar_lea.vmem (!%p988_p5), [#allocation2], %s481_s17 }
  0x51   : > { %694 = dma.done.wait (%p989_p0), %s221_s23, 128  }
  0x52   : > { %696 = vsyncadd (%p989_p0), %s221_s23, 4294967168  ;;  %p990_p11 = scmp.eq.s32.totalorder %s780_s22, 0 }
  0x54   : > { %698 = dma.done.wait (%p990_p11), [#allocation6], 896   ;;  %p991_p1 = pmov %p990_p11 }
  0x55   : > { %vm256_vm0 = vcmask 408576   ;;  %v255_v0 = vld [vmem:[%s224_s27] sm:$0xff]  ;;  %v287_v7 = vld [vmem:[#allocation5] sm:$0xff]  ;;  %v288_v8 = vld [vmem:[#allocation5 + $0x8] sm:$0xff]  ;;  %v725_v10 = vmov 0.0|0.0   ;;  %vm726_vm1 = vmmov 0  }
  0x56   : > { %700 = vsyncadd (%p991_p1), [#allocation6], 4294966400  ;;  %v257_v1 = vsel %vm256_vm0, %v255_v0, 0.0  ;;  %v289_v9 = vld [vmem:[#allocation5 + $0x10] sm:$0xff]  ;;  %518 = vmatprep.subr.bf16.mxu0 %v725_v10  ;;  %v519_v11 = vpack.c.bf16 %v288_v8, %v287_v7  ;;  %v290_v12 = vld [vmem:[#allocation5 + $0x18] sm:$0xff]  ;;  %v727_v13 = vmov 0.0  }
  0x57   : > { %258 = vadd.xlane.f32.xlu0 %v257_v1  ;;  %515 = vmatprep.mubr.msk.f32.mxu0 %vm726_vm1, %v727_v13  ;;  %v522_v14 = vpack.c.bf16 %v290_v12, %v289_v9  ;;  %v291_v15 = vld [vmem:[#allocation5 + $0x20] sm:$0xff]  ;;  %v292_v16 = vld [vmem:[#allocation5 + $0x28] sm:$0xff]  ;;  %v293_v18 = vld [vmem:[#allocation5 + $0x30] sm:$0x3]  ;;  %vm304_vm2 = vcmask 1041408   ;;  %s490_s11 = sshll.u32 %s780_s22, 7 }
  0x58   : > { %520 = vmatpush3.bf16.msra.mxu0 %v519_v11  ;;  %v525_v17 = vpack.c.bf16 %v292_v16, %v291_v15  ;;  %v484_v23 = vld [vmem:[%s973_s1] ss:$0 sm:$0xff]  ;;  %s254_s12 = scalar_lea.vmem [#allocation7], %s481_s17  ;;  %s927_s28 = scalar_lea.hbm %s977_s5, %s490_s11 }
  0x59   : > { %521 = vmatprep.subr.bf16.mxu0 %v725_v10  ;;  %v485_v25 = vld [vmem:[%s974_s2] ss:$0 sm:$0xff]  ;;  %s394_s10 = sshll.u32 %s254_s12, 4  ;;  %s381_s23 = scalar_lea.sflag [#allocation4], %s895_s16  ;;  %s929_s10 = int_to_ptr.vmem [resolvable:$true] %s394_s10 }
  0x5a   : > { %v486_v28 = vld [vmem:[%s976_s4] ss:$0 sm:$0xff]  ;;  %s649_s22 = scalar_lea.vmem %s929_s10, 128  ;;  %s728_s17 = smov [#allocation7]  }
  0x5b   : > { %p650_p4 = scmp.ne.s32.totalorder %s929_s10, %s649_s22  ;;  %s653_s27 = sshll.u32 %s728_s17, 4  ;;  %s654_s27 = int_to_ptr.vmem [resolvable:$false] %s653_s27 }
  0x5c   : > { %523 = vmatpush3.bf16.msra.mxu0 %v522_v14  ;;  %s655_s24 = scalar_lea.vmem %s654_s27, 256  ;;  %p656_p10 = scmp.lt.s32.totalorder %s929_s10, %s654_s27 }
  0x5d   : > { %524 = vmatprep.subr.bf16.mxu0 %v725_v10  ;;  %p651_p6 = pnand %p650_p4, %p850_p12  ;;  %p657_p13 = scmp.lt.s32.totalorder %s655_s24, %s649_s22 }
  0x5f   : > { %p652_p8 = pneg %p651_p6  ;;  %p658_p3 = por %p657_p13, %p656_p10 }
  0x60   : > { %526 = vmatpush3.bf16.msra.mxu0 %v525_v17 }
  0x61   : > { %513 = vmatprep.subr.mxu0 %v727_v13  ;;  %p659_p7 = pnand %p658_p3, %p652_p8 }
  0x64   : > { %514 = vmatpush3.msk.msra.mxu0 %vm304_vm2, %v293_v18 }
  0xe4   : > { %v259_v2 = vpop.xlane.xlu0 %258 }
  0xe5   : > { %v261_v3 = vmul.f32 0.02, %v259_v2 }
  0xe7   : > { %v262_v4 = vsub.f32 %v255_v0, %v261_v3 }
  0xe9   : > { %v263_v5 = vmul.f32 %v262_v4, %v262_v4 }
  0xeb   : > { %v264_v6 = vsel %vm256_vm0, %v263_v5, 0.0 }
  0xec   : > { %265 = vadd.xlane.f32.xlu0 %v264_v6 }
 0x179   : > { %v266_v19 = vpop.xlane.xlu0 %265 }
 0x17a   : > { %v267_v20 = vmul.f32 0.02, %v266_v19 }
 0x17c   : > { %v268_v21 = vadd.f32 1e-05, %v267_v20 }
 0x17e   : > { %589 = vrsqrt.f32 %v268_v21 }
 0x188   : > { %v590_v22 = vpop.eup %589 }
 0x189   : > { %v270_v24 = vmul.f32 %v590_v22, %v262_v4 }
 0x18b   : > { %v278_v26 = vmul.f32 %v484_v23, %v270_v24 }
 0x18d   : > { %v286_v27 = vadd.f32 %v485_v25, %v278_v26 }
 0x18f   : > { %516 = vmatmul.mubr.msk.f32.vlgmr.msra.gmra.mrb[0].mxu0 %vm256_vm0, %v286_v27 }
 0x262   : > { %v374_v29 = vpop.f32.mrb[0].mxu0 }
 0x263   : > { %v375_v30 = vadd.f32 %v486_v28, %v374_v29  ;;  %v517_v31 = vpop.f32.mrb[1].mxu0 }
 0x265   : > { %v378_v32 = vadd.f32 %v375_v30, %v255_v0 }
 0x267   : > { %379 = vst.msk [vmem:[%s254_s12] sm:$0xff] %vm256_vm0, %v378_v32 }
 0x268   : > { %662 = shalt.err (!%p659_p7)
}
 0x269   : > { %s663_s16 = scalar_lea.hbm %s927_s28, 128  ;;  %s667_s6 = scalar_lea.hbm %s977_s5, 256 }
 0x26a   : > { %p664_p9 = scmp.ne.s32.totalorder %s927_s28, %s663_s16  ;;  %p668_p0 = scmp.lt.u32.totalorder %s927_s28, %s977_s5 }
 0x26b   : > { %p669_p11 = scmp.lt.u32.totalorder %s667_s6, %s663_s16  ;;  %p671_p4 = scmp.lt.u32.totalorder %s663_s16, %s927_s28 }
 0x26c   : > { %p665_p2 = pnand %p664_p9, %p850_p12 }
 0x26d   : > { %p670_p1 = por %p669_p11, %p668_p0 }
 0x26e   : > { %p666_p5 = pneg %p665_p2 }
 0x26f   : > { %p672_p6 = por %p671_p4, %p670_p1 }
 0x271   : > { %p673_p8 = pnand %p672_p6, %p666_p5 }
 0x273   : > { %676 = shalt.err (!%p673_p8)
}
 0x274   : > { %533 = dma.vmem_to_hbm [thread:$0]  (%p850_p12), %s929_s10, 128, %s927_s28, %s381_s23  }
 0x275 PF: > { %s406_s11 = sand.u32 1, %s707_s18   ;;  %p992_p10 = scmp.ne.s32.totalorder %s982_s25, 0 }
 0x276   : > { %p993_p13 = scmp.ge.s32.totalorder %s719_s21, 2  ;;  %s407_s12 = scalar_lea.sflag [#allocation4], %s406_s11 }
 0x278   : > { %p544_p3 = pnand %p993_p13, %p992_p10 }
 0x27a   : > { %702 = dma.done.wait (!%p544_p3), %s407_s12, 128  }
 0x27b   : > { %704 = vsyncadd (!%p544_p3), %s407_s12, 4294967168  ;;  %p19_p7 = scmp.ge.s32.totalorder %s815_s30, 4   ;;  %s994_s18 = smov %s711_s19 }
 0x27c   : > { %s995_s19 = smov %s715_s20  ;;  %s996_s20 = smov %s846_s8 }
 0x27d   : > { %s997_s21 = smov %s815_s30  ;;  %21 = sbr.rel (!%p19_p7) target bundleno = 6 (0x6), region = 89 }
 0x284   :  { %412 = vsyncpa [#allocation3], 1 }
 0x285   :  { %414 = vsyncpa [#allocation3 + $0x1], 1 }
 0x286   :  { %415 = vsyncpa [#allocation6], 1 }
 0x287   :  { %416 = vsyncpa [#allocation4], 1 }
 0x288   :  { %418 = vsyncpa [#allocation4 + $0x1], 1 }

</bundles_post_ra>
